<compile_context>
chip_gen: v7x
topology: tpu7x:2x2x1
jax: 0.10.0
libtpu: 0.0.40
codegen_flags: <defaults>
</compile_context>

<pallas_src>
import math

import jax
import jax.numpy as jnp
from jax.experimental import pallas as pl
from jax.experimental.pallas import tpu as pltpu


# ---------------------------------------------------------------------------
# Options (synthetic, deterministic)
# ---------------------------------------------------------------------------
class Opts:
    img_size = 16
    num_multipose = 4
    optimizeAzRange = 30.0
    optimizeElRange = 10.0
    optimizeCrRange = 10.0
    quatScorePeakiness = 20.0
    lossToScorePower = 2          # integer -> integer_pow inside the kernel
    optimizeSteps = 0             # camera-pose optimization skipped


# ---------------------------------------------------------------------------
# Fused per-batch kernel: mask L2+DT loss, softmin scores, weighted-loss
# partial, azElRot->quat pipeline, error-quat w.
# ---------------------------------------------------------------------------
def _hamilton(qa, qb):
    """Scalar-first hamilton product on tuples of (1, P) row tensors."""
    a0, a1, a2, a3 = qa
    b0, b1, b2, b3 = qb
    return (
        a0 * b0 - a1 * b1 - a2 * b2 - a3 * b3,
        a0 * b1 + a1 * b0 + a2 * b3 - a3 * b2,
        a0 * b2 - a1 * b3 + a2 * b0 + a3 * b1,
        a0 * b3 + a1 * b2 - a2 * b1 + a3 * b0,
    )


def make_fused_kernel(az_range, el_range, cr_range, peakiness, power, hw):
    az_scale = math.pi * az_range / 180.0
    el_scale = math.pi * el_range / 180.0
    cr_scale = math.pi * cr_range / 180.0
    inv_hw = 1.0 / float(hw)

    def kernel(rend_ref, mask_ref, dt_ref, aec_ref, bq_ref, gtq_ref,
               loss_ref, quat_ref, errw_ref, score_ref, wloss_ref):
        # ---- per-pose rendered-mask L2+DT loss, mean over H*W -------------
        # Casts happen on the VPU (inputs may arrive bf16/u8 at real sizes).
        rend = rend_ref[0].astype(jnp.float32)        # (P, HW)
        gt = mask_ref[0].astype(jnp.float32)          # (1, HW) -> bcast over P
        dt = dt_ref[0].astype(jnp.float32)            # (1, HW)
        diff = rend - gt
        pix = diff * diff + rend * dt                 # reduction='none'
        loss = jnp.sum(pix, axis=-1, keepdims=True) * inv_hw     # (P, 1)
        loss_ref[0] = loss

        # ---- softmin scoring over poses + per-batch weighted-loss partial -
        lmin = jnp.min(loss, axis=0, keepdims=True)
        lmax = jnp.max(loss, axis=0, keepdims=True)
        rng = lmax - lmin
        safe_rng = jnp.where(rng > 0.0, rng, 1.0)     # guard all-equal poses
        lres = (loss - lmin) / safe_rng               # exact division
        lres = lres ** power
        logits = -lres * peakiness                    # softmin == softmax(-x)
        logits = logits - jnp.max(logits, axis=0, keepdims=True)
        e = jnp.exp(logits)
        score = e / jnp.sum(e, axis=0, keepdims=True)  # exact division
        score_ref[0] = score
        # partial of (loss_mp * score).sum(dim=1); mean over batch in wrapper
        wloss_ref[0] = jnp.sum(loss * score, keepdims=True)      # (1, 1)

        # ---- camera az/el/cr -> quaternion (poses on the lane axis) -------
        aec = aec_ref[0].astype(jnp.float32)          # (3, P)
        az = jnp.tanh(0.1 * aec[0:1, :]) * az_scale   # (1, P)
        el = jnp.tanh(0.1 * aec[1:2, :]) * el_scale
        cr = jnp.tanh(0.1 * aec[2:3, :]) * cr_scale
        zero = jnp.zeros_like(az)
        # azElRot_to_quat: az about y, el about x, cr about z; q = cr*(el*az)
        q_az = (jnp.cos(0.5 * az), zero, jnp.sin(0.5 * az), zero)
        q_el = (jnp.cos(0.5 * el), jnp.sin(0.5 * el), zero, zero)
        q_cr = (jnp.cos(0.5 * cr), zero, zero, jnp.sin(0.5 * cr))
        q = _hamilton(q_el, q_az)
        q = _hamilton(q_cr, q)
        # compose with base quat: quat = hamilton(quat, base_quat)
        bq = bq_ref[0].astype(jnp.float32)            # (4, P)
        q = _hamilton(q, (bq[0:1, :], bq[1:2, :], bq[2:3, :], bq[3:4, :]))
        quat_ref[0, 0:1, :] = q[0]
        quat_ref[0, 1:2, :] = q[1]
        quat_ref[0, 2:3, :] = q[2]
        quat_ref[0, 3:4, :] = q[3]

        # ---- error-quat w = scalar part of hamilton(q, conj(gt_quat)) -----
        gtq = gtq_ref[0].astype(jnp.float32)          # (4, 1) -> bcast over P
        errw = (q[0] * gtq[0:1, :] + q[1] * gtq[1:2, :]
                + q[2] * gtq[2:3, :] + q[3] * gtq[3:4, :])        # (1, P)
        errw_ref[0] = jnp.clip(errw, -1.0 + 1e-6, 1.0 - 1e-6)

    return kernel


def fused_cam_init_call(rend3, mask3, dt3, aec, bq, gtq, opts):
    """Fused pallas_call, gridded over the batch axis (parallel)."""
    N, P, HW = rend3.shape
    kernel = make_fused_kernel(
        opts.optimizeAzRange, opts.optimizeElRange, opts.optimizeCrRange,
        opts.quatScorePeakiness, opts.lossToScorePower, HW)

    # Blocked specs (one batch element per grid step) -> operands live in VMEM.
    def blk(shape):
        return pl.BlockSpec((1,) + shape, lambda i: (i, 0, 0))

    return pl.pallas_call(
        kernel,
        grid=(N,),
        in_specs=[
            blk((P, HW)),    # rendered masks
            blk((1, HW)),    # gt mask (broadcast over poses in VMEM)
            blk((1, HW)),    # mask distance transform
            blk((3, P)),     # az/el/cr camera params (rows 3:6)
            blk((4, P)),     # base quaternions
            blk((4, 1)),     # gt quaternion (broadcast over poses in VMEM)
        ],
        out_specs=(
            blk((P, 1)),     # per-pose loss
            blk((4, P)),     # predicted quaternion (component-major)
            blk((1, P)),     # error-quat w (pre-clipped)
            blk((P, 1)),     # softmin scores
            blk((1, 1)),     # per-batch sum_p(loss * score)
        ),
        out_shape=(
            jax.ShapeDtypeStruct((N, P, 1), jnp.float32),
            jax.ShapeDtypeStruct((N, 4, P), jnp.float32),
            jax.ShapeDtypeStruct((N, 1, P), jnp.float32),
            jax.ShapeDtypeStruct((N, P, 1), jnp.float32),
            jax.ShapeDtypeStruct((N, 1, 1), jnp.float32),
        ),
        compiler_params=pltpu.CompilerParams(
            dimension_semantics=("parallel",),
            vmem_limit_bytes=32 * 1024 * 1024,
        ),
    )(rend3, mask3, dt3, aec, bq, gtq)


# ---------------------------------------------------------------------------
# ForwardWrapper.forward (thin JAX glue; called under jax.jit)
# ---------------------------------------------------------------------------
def forward_wrapper_forward(input_dict, buffers, rend_mask, opts):
    img = input_dict["img"]                      # (N, 3, H, W)  NCHW
    mask = input_dict["mask"]                    # (N, H, W)
    mask_dt = input_dict["mask_dt"]              # (N, H, W)
    cam_poses = input_dict["cam_poses"]          # (N, P, 7) scale trans(2) quat(4)
    gt_cam = input_dict["gt_camera_pose"]        # (N, 7)

    N, H, W = mask.shape
    P = opts.num_multipose
    HW = H * W

    mean_shape = buffers["model_mean_shape"]     # (V, 3)
    V = mean_shape.shape[0]

    # Lane-dense views; no astype / pose replication / scatter in the wrapper.
    rend3 = rend_mask.reshape(N, P, HW)
    mask3 = mask.reshape(N, 1, HW)
    dt3 = mask_dt.reshape(N, 1, HW)

    # Camera params after the (skipped) pose optimization: scale/trans pass
    # straight through in the wrapper; az/el/cr are structurally zero.
    aec = jnp.zeros((N, 3, P), jnp.float32)
    bq = jnp.swapaxes(cam_poses[..., 3:7], 1, 2)          # (N, 4, P)
    gtq = gt_cam[:, 3:7].reshape(N, 4, 1)                 # (N, 4, 1)

    loss3, quat_c, errw3, score3, wloss_n = fused_cam_init_call(
        rend3, mask3, dt3, aec, bq, gtq, opts)

    loss_mp = loss3[:, :, 0]                              # (N, P)
    quat_score = score3[:, :, 0]                          # (N, P)
    quat_np4 = jnp.swapaxes(quat_c, 1, 2)                 # (N, P, 4)
    cam_pred = jnp.concatenate([cam_poses[..., 0:3], quat_np4], axis=-1)

    # quat2axisangle (angle only) + wrap + rad->deg (w already clipped in-kernel)
    angle = 2.0 * jnp.arccos(errw3[:, 0, :])              # (N, P)
    angle = jnp.minimum(angle, 2.0 * math.pi - angle)
    quat_error = angle * (180.0 / math.pi)

    rend_mask_loss = jnp.mean(wloss_n)                    # mean over batch
    total_loss_mp = loss_mp
    total_loss = rend_mask_loss
    total_loss_num = jnp.zeros_like(total_loss) + float(img.shape[0])

    pred_v = jnp.broadcast_to(mean_shape[None], (N, V, 3))

    statistics = {
        "quat_values": cam_pred[..., 3:7],
        "quat_scores": quat_score,
        "gt_quat": gt_cam[:, 3:7],
        "quat_error": quat_error,
    }

    return {
        "input_img": img,
        "input_mask": mask,
        "frame_id": input_dict["frame_id"],
        "gt_camera_pose": gt_cam,
        "total_loss_num": total_loss_num,
        "total_loss": total_loss,
        "total_loss_mp": total_loss_mp,
        "rend_mask_loss": rend_mask_loss,
        "quat_score": quat_score,
        "pred_v": pred_v,
        "cam_pred": cam_pred,
        "mean_shape": mean_shape,
        "quat_error": quat_error,
        "statistics": statistics,
    }


# ---------------------------------------------------------------------------
# main
# ---------------------------------------------------------------------------
if __name__ == "__main__":
    opts = Opts()
    N, P, H, W = 2, opts.num_multipose, opts.img_size, opts.img_size
    V, F = 12, 20
    NP = N * P

    key = jax.random.PRNGKey(0)
    keys = jax.random.split(key, 12)

    # deterministic "buffers" (ForwardWrapper.__init__ registered buffers)
    verts = jax.random.normal(keys[0], (V, 3), jnp.float32)
    faces = jax.random.randint(keys[1], (F, 3), 0, V, jnp.int32)
    verts_uv = jax.random.uniform(keys[2], (V, 2), jnp.float32)
    buffers = {
        "verts": verts,
        "faces": faces,
        "verts_uv": verts_uv,
        "model_mean_shape": verts,   # ShapeCamTexNet.get_mean_shape() ~ mean mesh
    }

    # deterministic inputs
    img = jax.random.normal(keys[3], (N, 3, H, W), jnp.float32)
    mask = (jax.random.uniform(keys[4], (N, H, W)) > 0.5).astype(jnp.float32)
    mask_dt = jax.random.uniform(keys[5], (N, H, W), jnp.float32) * 4.0

    quat_cp = jax.random.normal(keys[6], (N, P, 4), jnp.float32)
    quat_cp = quat_cp / jnp.linalg.norm(quat_cp, axis=-1, keepdims=True)
    st_cp = jax.random.uniform(keys[7], (N, P, 3), jnp.float32)
    cam_poses = jnp.concatenate([st_cp, quat_cp], axis=-1)          # (N, P, 7)
    cam_scores = jax.random.uniform(keys[8], (N, P), jnp.float32)

    gt_quat = jax.random.normal(keys[9], (N, 4), jnp.float32)
    gt_quat = gt_quat / jnp.linalg.norm(gt_quat, axis=-1, keepdims=True)
    gt_st = jax.random.uniform(keys[10], (N, 3), jnp.float32)
    gt_camera_pose = jnp.concatenate([gt_st, gt_quat], axis=-1)     # (N, 7)

    # stand-in for the differentiable rasterizer output (see TODO at top)
    rend_mask = jax.random.uniform(keys[11], (NP, H, W), jnp.float32)

    input_dict = {
        "real_iter": 0,
        "img": img,
        "mask": mask,
        "mask_dt": mask_dt,
        "frame_id": jnp.arange(N, dtype=jnp.int32),
        "cam_poses": cam_poses,
        "cam_scores": cam_scores,
        "gt_camera_pose": gt_camera_pose,
    }

    # jit the whole forward path (opts captured by closure).
    forward_fn = jax.jit(
        lambda inp, bufs, rend: forward_wrapper_forward(inp, bufs, rend, opts))

    out = forward_fn(input_dict, buffers, rend_mask)
    out = jax.block_until_ready(out)
    print("KERNEL_OK")
</pallas_src>

<mosaic_0001>
module attributes {stable_mosaic.version = 11 : i64} {
  func.func @kernel(%arg0: i32, %arg1: memref<1x4x256xf32, #tpu.memory_space<vmem>>, %arg2: memref<1x1x256xf32, #tpu.memory_space<vmem>>, %arg3: memref<1x1x256xf32, #tpu.memory_space<vmem>>, %arg4: memref<1x3x4xf32, #tpu.memory_space<vmem>>, %arg5: memref<1x4x4xf32, #tpu.memory_space<vmem>>, %arg6: memref<1x4x1xf32, #tpu.memory_space<vmem>>, %arg7: memref<1x4x1xf32, #tpu.memory_space<vmem>>, %arg8: memref<1x4x4xf32, #tpu.memory_space<vmem>>, %arg9: memref<1x1x4xf32, #tpu.memory_space<vmem>>, %arg10: memref<1x4x1xf32, #tpu.memory_space<vmem>>, %arg11: memref<1x1x1xf32, #tpu.memory_space<vmem>>) attributes {dimension_semantics = [#tpu.dimension_semantics<parallel>], iteration_bounds = array<i64: 2>, scalar_prefetch = 0 : i64, scratch_operands = 0 : i64, tpu.core_type = #tpu.core_type<tc>, window_params = [{transform_indices = @transform_0, window_bounds = array<i64: 1, 4, 256>}, {transform_indices = @transform_1, window_bounds = array<i64: 1, 1, 256>}, {transform_indices = @transform_2, window_bounds = array<i64: 1, 1, 256>}, {transform_indices = @transform_3, window_bounds = array<i64: 1, 3, 4>}, {transform_indices = @transform_4, window_bounds = array<i64: 1, 4, 4>}, {transform_indices = @transform_5, window_bounds = array<i64: 1, 4, 1>}, {transform_indices = @transform_6, window_bounds = array<i64: 1, 4, 1>}, {transform_indices = @transform_7, window_bounds = array<i64: 1, 4, 4>}, {transform_indices = @transform_8, window_bounds = array<i64: 1, 1, 4>}, {transform_indices = @transform_9, window_bounds = array<i64: 1, 4, 1>}, {transform_indices = @transform_10, window_bounds = array<i64: 1, 1, 1>}]} {
    %c0 = arith.constant 0 : index
    %c0_0 = arith.constant 0 : index
    %c0_1 = arith.constant 0 : index
    %0 = vector.load %arg1[%c0, %c0_0, %c0_1] : memref<1x4x256xf32, #tpu.memory_space<vmem>>, vector<1x4x256xf32>
    %1 = vector.shape_cast %0 : vector<1x4x256xf32> to vector<4x256xf32>
    %c0_2 = arith.constant 0 : index
    %c0_3 = arith.constant 0 : index
    %c0_4 = arith.constant 0 : index
    %2 = vector.load %arg2[%c0_2, %c0_3, %c0_4] : memref<1x1x256xf32, #tpu.memory_space<vmem>>, vector<1x1x256xf32>
    %3 = vector.shape_cast %2 : vector<1x1x256xf32> to vector<1x256xf32>
    %c0_5 = arith.constant 0 : index
    %c0_6 = arith.constant 0 : index
    %c0_7 = arith.constant 0 : index
    %4 = vector.load %arg3[%c0_5, %c0_6, %c0_7] : memref<1x1x256xf32, #tpu.memory_space<vmem>>, vector<1x1x256xf32>
    %5 = vector.shape_cast %4 : vector<1x1x256xf32> to vector<1x256xf32>
    %6 = vector.broadcast %3 : vector<1x256xf32> to vector<4x256xf32>
    %7 = arith.subf %1, %6 : vector<4x256xf32>
    %8 = arith.mulf %7, %7 : vector<4x256xf32>
    %9 = vector.broadcast %5 : vector<1x256xf32> to vector<4x256xf32>
    %10 = arith.mulf %1, %9 : vector<4x256xf32>
    %11 = arith.addf %8, %10 : vector<4x256xf32>
    %cst = arith.constant dense<0.000000e+00> : vector<4xf32>
    %12 = vector.multi_reduction <add>, %11, %cst [1] : vector<4x256xf32> to vector<4xf32>
    %13 = vector.shape_cast %12 : vector<4xf32> to vector<4x1xf32>
    %cst_8 = arith.constant 3.906250e-03 : f32
    %14 = vector.broadcast %cst_8 : f32 to vector<4x1xf32>
    %15 = arith.mulf %13, %14 : vector<4x1xf32>
    %c0_9 = arith.constant 0 : index
    %c0_10 = arith.constant 0 : index
    %c0_11 = arith.constant 0 : index
    %16 = vector.load %arg7[%c0_9, %c0_10, %c0_11] : memref<1x4x1xf32, #tpu.memory_space<vmem>>, vector<1x4x1xf32>
    %17 = vector.shape_cast %16 : vector<1x4x1xf32> to vector<4x1xf32>
    %18 = vector.shape_cast %15 : vector<4x1xf32> to vector<1x4x1xf32>
    tpu.vector_store %arg7[%c0_9, %c0_10, %c0_11], %18 {strides = array<i32>} : memref<1x4x1xf32, #tpu.memory_space<vmem>>, vector<1x4x1xf32>,
    %cst_12 = arith.constant dense<0x7F800000> : vector<1xf32>
    %19 = vector.multi_reduction <minimumf>, %15, %cst_12 [0] : vector<4x1xf32> to vector<1xf32>
    %20 = vector.shape_cast %19 : vector<1xf32> to vector<1x1xf32>
    %cst_13 = arith.constant dense<0xFF800000> : vector<1xf32>
    %21 = vector.multi_reduction <maximumf>, %15, %cst_13 [0] : vector<4x1xf32> to vector<1xf32>
    %22 = vector.shape_cast %21 : vector<1xf32> to vector<1x1xf32>
    %23 = arith.subf %22, %20 : vector<1x1xf32>
    %cst_14 = arith.constant 0.000000e+00 : f32
    %24 = vector.broadcast %cst_14 : f32 to vector<1x1xf32>
    %25 = arith.cmpf ogt, %23, %24 : vector<1x1xf32>
    %cst_15 = arith.constant 1.000000e+00 : f32
    %26 = vector.broadcast %cst_15 : f32 to vector<1x1xf32>
    %27 = arith.select %25, %23, %26 : vector<1x1xi1>, vector<1x1xf32>
    %28 = vector.broadcast %20 : vector<1x1xf32> to vector<4x1xf32>
    %29 = arith.subf %15, %28 : vector<4x1xf32>
    %30 = vector.broadcast %27 : vector<1x1xf32> to vector<4x1xf32>
    %31 = arith.divf %29, %30 : vector<4x1xf32>
    %32 = arith.mulf %31, %31 : vector<4x1xf32>
    %cst_16 = arith.constant 0.000000e+00 : f32
    %33 = vector.broadcast %cst_16 : f32 to vector<4x1xf32>
    %34 = arith.subf %33, %32 : vector<4x1xf32>
    %cst_17 = arith.constant 2.000000e+01 : f32
    %35 = vector.broadcast %cst_17 : f32 to vector<4x1xf32>
    %36 = arith.mulf %34, %35 : vector<4x1xf32>
    %cst_18 = arith.constant dense<0xFF800000> : vector<1xf32>
    %37 = vector.multi_reduction <maximumf>, %36, %cst_18 [0] : vector<4x1xf32> to vector<1xf32>
    %38 = vector.shape_cast %37 : vector<1xf32> to vector<1x1xf32>
    %39 = vector.broadcast %38 : vector<1x1xf32> to vector<4x1xf32>
    %40 = arith.subf %36, %39 : vector<4x1xf32>
    %41 = math.exp %40 : vector<4x1xf32>
    %cst_19 = arith.constant dense<0.000000e+00> : vector<1xf32>
    %42 = vector.multi_reduction <add>, %41, %cst_19 [0] : vector<4x1xf32> to vector<1xf32>
    %43 = vector.shape_cast %42 : vector<1xf32> to vector<1x1xf32>
    %44 = vector.broadcast %43 : vector<1x1xf32> to vector<4x1xf32>
    %45 = arith.divf %41, %44 : vector<4x1xf32>
    %c0_20 = arith.constant 0 : index
    %c0_21 = arith.constant 0 : index
    %c0_22 = arith.constant 0 : index
    %46 = vector.load %arg10[%c0_20, %c0_21, %c0_22] : memref<1x4x1xf32, #tpu.memory_space<vmem>>, vector<1x4x1xf32>
    %47 = vector.shape_cast %46 : vector<1x4x1xf32> to vector<4x1xf32>
    %48 = vector.shape_cast %45 : vector<4x1xf32> to vector<1x4x1xf32>
    tpu.vector_store %arg10[%c0_20, %c0_21, %c0_22], %48 {strides = array<i32>} : memref<1x4x1xf32, #tpu.memory_space<vmem>>, vector<1x4x1xf32>,
    %49 = arith.mulf %15, %45 : vector<4x1xf32>
    %50 = vector.shape_cast %49 : vector<4x1xf32> to vector<1x4x1xf32>
    %cst_23 = arith.constant dense<0.000000e+00> : vector<1xf32>
    %51 = vector.multi_reduction <add>, %50, %cst_23 [1, 2] : vector<1x4x1xf32> to vector<1xf32>
    %52 = vector.shape_cast %51 : vector<1xf32> to vector<1x1x1xf32>
    %53 = vector.extract %52[0, 0, 0] : f32 from vector<1x1x1xf32>
    %54 = vector.broadcast %53 : f32 to vector<1x1xf32>
    %c0_24 = arith.constant 0 : index
    %c0_25 = arith.constant 0 : index
    %c0_26 = arith.constant 0 : index
    %55 = vector.load %arg11[%c0_24, %c0_25, %c0_26] : memref<1x1x1xf32, #tpu.memory_space<vmem>>, vector<1x1x1xf32>
    %56 = vector.shape_cast %55 : vector<1x1x1xf32> to vector<1x1xf32>
    %57 = vector.shape_cast %54 : vector<1x1xf32> to vector<1x1x1xf32>
    tpu.vector_store %arg11[%c0_24, %c0_25, %c0_26], %57 {strides = array<i32>} : memref<1x1x1xf32, #tpu.memory_space<vmem>>, vector<1x1x1xf32>,
    %c0_27 = arith.constant 0 : index
    %c0_28 = arith.constant 0 : index
    %c0_29 = arith.constant 0 : index
    %58 = vector.load %arg4[%c0_27, %c0_28, %c0_29] : memref<1x3x4xf32, #tpu.memory_space<vmem>>, vector<1x3x4xf32>
    %59 = vector.shape_cast %58 : vector<1x3x4xf32> to vector<3x4xf32>
    %60 = vector.extract_strided_slice %59 {offsets = [0, 0], sizes = [1, 4], strides = [1, 1]} : vector<3x4xf32> to vector<1x4xf32>
    %cst_30 = arith.constant 1.000000e-01 : f32
    %61 = vector.broadcast %cst_30 : f32 to vector<1x4xf32>
    %62 = arith.mulf %61, %60 : vector<1x4xf32>
    %63 = math.tanh %62 : vector<1x4xf32>
    %cst_31 = arith.constant 0.52359879 : f32
    %64 = vector.broadcast %cst_31 : f32 to vector<1x4xf32>
    %65 = arith.mulf %63, %64 : vector<1x4xf32>
    %66 = vector.extract_strided_slice %59 {offsets = [1, 0], sizes = [1, 4], strides = [1, 1]} : vector<3x4xf32> to vector<1x4xf32>
    %cst_32 = arith.constant 1.000000e-01 : f32
    %67 = vector.broadcast %cst_32 : f32 to vector<1x4xf32>
    %68 = arith.mulf %67, %66 : vector<1x4xf32>
    %69 = math.tanh %68 : vector<1x4xf32>
    %cst_33 = arith.constant 0.17453292 : f32
    %70 = vector.broadcast %cst_33 : f32 to vector<1x4xf32>
    %71 = arith.mulf %69, %70 : vector<1x4xf32>
    %72 = vector.extract_strided_slice %59 {offsets = [2, 0], sizes = [1, 4], strides = [1, 1]} : vector<3x4xf32> to vector<1x4xf32>
    %cst_34 = arith.constant 1.000000e-01 : f32
    %73 = vector.broadcast %cst_34 : f32 to vector<1x4xf32>
    %74 = arith.mulf %73, %72 : vector<1x4xf32>
    %75 = math.tanh %74 : vector<1x4xf32>
    %cst_35 = arith.constant 0.17453292 : f32
    %76 = vector.broadcast %cst_35 : f32 to vector<1x4xf32>
    %77 = arith.mulf %75, %76 : vector<1x4xf32>
    %cst_36 = arith.constant 0.000000e+00 : f32
    %78 = vector.broadcast %cst_36 : f32 to vector<1x4xf32>
    %cst_37 = arith.constant 5.000000e-01 : f32
    %79 = vector.broadcast %cst_37 : f32 to vector<1x4xf32>
    %80 = arith.mulf %79, %65 : vector<1x4xf32>
    %81 = math.cos %80 : vector<1x4xf32>
    %cst_38 = arith.constant 5.000000e-01 : f32
    %82 = vector.broadcast %cst_38 : f32 to vector<1x4xf32>
    %83 = arith.mulf %82, %65 : vector<1x4xf32>
    %84 = math.sin %83 : vector<1x4xf32>
    %cst_39 = arith.constant 5.000000e-01 : f32
    %85 = vector.broadcast %cst_39 : f32 to vector<1x4xf32>
    %86 = arith.mulf %85, %71 : vector<1x4xf32>
    %87 = math.cos %86 : vector<1x4xf32>
    %cst_40 = arith.constant 5.000000e-01 : f32
    %88 = vector.broadcast %cst_40 : f32 to vector<1x4xf32>
    %89 = arith.mulf %88, %71 : vector<1x4xf32>
    %90 = math.sin %89 : vector<1x4xf32>
    %cst_41 = arith.constant 5.000000e-01 : f32
    %91 = vector.broadcast %cst_41 : f32 to vector<1x4xf32>
    %92 = arith.mulf %91, %77 : vector<1x4xf32>
    %93 = math.cos %92 : vector<1x4xf32>
    %cst_42 = arith.constant 5.000000e-01 : f32
    %94 = vector.broadcast %cst_42 : f32 to vector<1x4xf32>
    %95 = arith.mulf %94, %77 : vector<1x4xf32>
    %96 = math.sin %95 : vector<1x4xf32>
    %97 = arith.mulf %87, %81 : vector<1x4xf32>
    %98 = arith.mulf %90, %78 : vector<1x4xf32>
    %99 = arith.subf %97, %98 : vector<1x4xf32>
    %100 = arith.mulf %78, %84 : vector<1x4xf32>
    %101 = arith.subf %99, %100 : vector<1x4xf32>
    %102 = arith.mulf %78, %78 : vector<1x4xf32>
    %103 = arith.subf %101, %102 : vector<1x4xf32>
    %104 = arith.mulf %87, %78 : vector<1x4xf32>
    %105 = arith.mulf %90, %81 : vector<1x4xf32>
    %106 = arith.addf %104, %105 : vector<1x4xf32>
    %107 = arith.mulf %78, %78 : vector<1x4xf32>
    %108 = arith.addf %106, %107 : vector<1x4xf32>
    %109 = arith.mulf %78, %84 : vector<1x4xf32>
    %110 = arith.subf %108, %109 : vector<1x4xf32>
    %111 = arith.mulf %87, %84 : vector<1x4xf32>
    %112 = arith.mulf %90, %78 : vector<1x4xf32>
    %113 = arith.subf %111, %112 : vector<1x4xf32>
    %114 = arith.mulf %78, %81 : vector<1x4xf32>
    %115 = arith.addf %113, %114 : vector<1x4xf32>
    %116 = arith.mulf %78, %78 : vector<1x4xf32>
    %117 = arith.addf %115, %116 : vector<1x4xf32>
    %118 = arith.mulf %87, %78 : vector<1x4xf32>
    %119 = arith.mulf %90, %84 : vector<1x4xf32>
    %120 = arith.addf %118, %119 : vector<1x4xf32>
    %121 = arith.mulf %78, %78 : vector<1x4xf32>
    %122 = arith.subf %120, %121 : vector<1x4xf32>
    %123 = arith.mulf %78, %81 : vector<1x4xf32>
    %124 = arith.addf %122, %123 : vector<1x4xf32>
    %125 = arith.mulf %93, %103 : vector<1x4xf32>
    %126 = arith.mulf %78, %110 : vector<1x4xf32>
    %127 = arith.subf %125, %126 : vector<1x4xf32>
    %128 = arith.mulf %78, %117 : vector<1x4xf32>
    %129 = arith.subf %127, %128 : vector<1x4xf32>
    %130 = arith.mulf %96, %124 : vector<1x4xf32>
    %131 = arith.subf %129, %130 : vector<1x4xf32>
    %132 = arith.mulf %93, %110 : vector<1x4xf32>
    %133 = arith.mulf %78, %103 : vector<1x4xf32>
    %134 = arith.addf %132, %133 : vector<1x4xf32>
    %135 = arith.mulf %78, %124 : vector<1x4xf32>
    %136 = arith.addf %134, %135 : vector<1x4xf32>
    %137 = arith.mulf %96, %117 : vector<1x4xf32>
    %138 = arith.subf %136, %137 : vector<1x4xf32>
    %139 = arith.mulf %93, %117 : vector<1x4xf32>
    %140 = arith.mulf %78, %124 : vector<1x4xf32>
    %141 = arith.subf %139, %140 : vector<1x4xf32>
    %142 = arith.mulf %78, %103 : vector<1x4xf32>
    %143 = arith.addf %141, %142 : vector<1x4xf32>
    %144 = arith.mulf %96, %110 : vector<1x4xf32>
    %145 = arith.addf %143, %144 : vector<1x4xf32>
    %146 = arith.mulf %93, %124 : vector<1x4xf32>
    %147 = arith.mulf %78, %117 : vector<1x4xf32>
    %148 = arith.addf %146, %147 : vector<1x4xf32>
    %149 = arith.mulf %78, %110 : vector<1x4xf32>
    %150 = arith.subf %148, %149 : vector<1x4xf32>
    %151 = arith.mulf %96, %103 : vector<1x4xf32>
    %152 = arith.addf %150, %151 : vector<1x4xf32>
    %c0_43 = arith.constant 0 : index
    %c0_44 = arith.constant 0 : index
    %c0_45 = arith.constant 0 : index
    %153 = vector.load %arg5[%c0_43, %c0_44, %c0_45] : memref<1x4x4xf32, #tpu.memory_space<vmem>>, vector<1x4x4xf32>
    %154 = vector.shape_cast %153 : vector<1x4x4xf32> to vector<4x4xf32>
    %155 = vector.extract_strided_slice %154 {offsets = [0, 0], sizes = [1, 4], strides = [1, 1]} : vector<4x4xf32> to vector<1x4xf32>
    %156 = vector.extract_strided_slice %154 {offsets = [1, 0], sizes = [1, 4], strides = [1, 1]} : vector<4x4xf32> to vector<1x4xf32>
    %157 = vector.extract_strided_slice %154 {offsets = [2, 0], sizes = [1, 4], strides = [1, 1]} : vector<4x4xf32> to vector<1x4xf32>
    %158 = vector.extract_strided_slice %154 {offsets = [3, 0], sizes = [1, 4], strides = [1, 1]} : vector<4x4xf32> to vector<1x4xf32>
    %159 = arith.mulf %131, %155 : vector<1x4xf32>
    %160 = arith.mulf %138, %156 : vector<1x4xf32>
    %161 = arith.subf %159, %160 : vector<1x4xf32>
    %162 = arith.mulf %145, %157 : vector<1x4xf32>
    %163 = arith.subf %161, %162 : vector<1x4xf32>
    %164 = arith.mulf %152, %158 : vector<1x4xf32>
    %165 = arith.subf %163, %164 : vector<1x4xf32>
    %166 = arith.mulf %131, %156 : vector<1x4xf32>
    %167 = arith.mulf %138, %155 : vector<1x4xf32>
    %168 = arith.addf %166, %167 : vector<1x4xf32>
    %169 = arith.mulf %145, %158 : vector<1x4xf32>
    %170 = arith.addf %168, %169 : vector<1x4xf32>
    %171 = arith.mulf %152, %157 : vector<1x4xf32>
    %172 = arith.subf %170, %171 : vector<1x4xf32>
    %173 = arith.mulf %131, %157 : vector<1x4xf32>
    %174 = arith.mulf %138, %158 : vector<1x4xf32>
    %175 = arith.subf %173, %174 : vector<1x4xf32>
    %176 = arith.mulf %145, %155 : vector<1x4xf32>
    %177 = arith.addf %175, %176 : vector<1x4xf32>
    %178 = arith.mulf %152, %156 : vector<1x4xf32>
    %179 = arith.addf %177, %178 : vector<1x4xf32>
    %180 = arith.mulf %131, %158 : vector<1x4xf32>
    %181 = arith.mulf %138, %157 : vector<1x4xf32>
    %182 = arith.addf %180, %181 : vector<1x4xf32>
    %183 = arith.mulf %145, %156 : vector<1x4xf32>
    %184 = arith.subf %182, %183 : vector<1x4xf32>
    %185 = arith.mulf %152, %155 : vector<1x4xf32>
    %186 = arith.addf %184, %185 : vector<1x4xf32>
    %c0_46 = arith.constant 0 : index
    %c0_47 = arith.constant 0 : index
    %c0_48 = arith.constant 0 : index
    %187 = vector.load %arg8[%c0_46, %c0_47, %c0_48] : memref<1x4x4xf32, #tpu.memory_space<vmem>>, vector<1x1x4xf32>
    %188 = vector.shape_cast %187 : vector<1x1x4xf32> to vector<1x4xf32>
    %189 = vector.shape_cast %165 : vector<1x4xf32> to vector<1x1x4xf32>
    tpu.vector_store %arg8[%c0_46, %c0_47, %c0_48], %189 {strides = array<i32>} : memref<1x4x4xf32, #tpu.memory_space<vmem>>, vector<1x1x4xf32>,
    %c0_49 = arith.constant 0 : index
    %c1 = arith.constant 1 : index
    %c0_50 = arith.constant 0 : index
    %190 = vector.load %arg8[%c0_49, %c1, %c0_50] : memref<1x4x4xf32, #tpu.memory_space<vmem>>, vector<1x1x4xf32>
    %191 = vector.shape_cast %190 : vector<1x1x4xf32> to vector<1x4xf32>
    %192 = vector.shape_cast %172 : vector<1x4xf32> to vector<1x1x4xf32>
    tpu.vector_store %arg8[%c0_49, %c1, %c0_50], %192 {strides = array<i32>} : memref<1x4x4xf32, #tpu.memory_space<vmem>>, vector<1x1x4xf32>,
    %c0_51 = arith.constant 0 : index
    %c2 = arith.constant 2 : index
    %c0_52 = arith.constant 0 : index
    %193 = vector.load %arg8[%c0_51, %c2, %c0_52] : memref<1x4x4xf32, #tpu.memory_space<vmem>>, vector<1x1x4xf32>
    %194 = vector.shape_cast %193 : vector<1x1x4xf32> to vector<1x4xf32>
    %195 = vector.shape_cast %179 : vector<1x4xf32> to vector<1x1x4xf32>
    tpu.vector_store %arg8[%c0_51, %c2, %c0_52], %195 {strides = array<i32>} : memref<1x4x4xf32, #tpu.memory_space<vmem>>, vector<1x1x4xf32>,
    %c0_53 = arith.constant 0 : index
    %c3 = arith.constant 3 : index
    %c0_54 = arith.constant 0 : index
    %196 = vector.load %arg8[%c0_53, %c3, %c0_54] : memref<1x4x4xf32, #tpu.memory_space<vmem>>, vector<1x1x4xf32>
    %197 = vector.shape_cast %196 : vector<1x1x4xf32> to vector<1x4xf32>
    %198 = vector.shape_cast %186 : vector<1x4xf32> to vector<1x1x4xf32>
    tpu.vector_store %arg8[%c0_53, %c3, %c0_54], %198 {strides = array<i32>} : memref<1x4x4xf32, #tpu.memory_space<vmem>>, vector<1x1x4xf32>,
    %c0_55 = arith.constant 0 : index
    %c0_56 = arith.constant 0 : index
    %c0_57 = arith.constant 0 : index
    %199 = vector.load %arg6[%c0_55, %c0_56, %c0_57] : memref<1x4x1xf32, #tpu.memory_space<vmem>>, vector<1x4x1xf32>
    %200 = vector.shape_cast %199 : vector<1x4x1xf32> to vector<4x1xf32>
    %201 = vector.extract_strided_slice %200 {offsets = [0, 0], sizes = [1, 1], strides = [1, 1]} : vector<4x1xf32> to vector<1x1xf32>
    %202 = vector.broadcast %201 : vector<1x1xf32> to vector<1x4xf32>
    %203 = arith.mulf %165, %202 : vector<1x4xf32>
    %204 = vector.extract_strided_slice %200 {offsets = [1, 0], sizes = [1, 1], strides = [1, 1]} : vector<4x1xf32> to vector<1x1xf32>
    %205 = vector.broadcast %204 : vector<1x1xf32> to vector<1x4xf32>
    %206 = arith.mulf %172, %205 : vector<1x4xf32>
    %207 = arith.addf %203, %206 : vector<1x4xf32>
    %208 = vector.extract_strided_slice %200 {offsets = [2, 0], sizes = [1, 1], strides = [1, 1]} : vector<4x1xf32> to vector<1x1xf32>
    %209 = vector.broadcast %208 : vector<1x1xf32> to vector<1x4xf32>
    %210 = arith.mulf %179, %209 : vector<1x4xf32>
    %211 = arith.addf %207, %210 : vector<1x4xf32>
    %212 = vector.extract_strided_slice %200 {offsets = [3, 0], sizes = [1, 1], strides = [1, 1]} : vector<4x1xf32> to vector<1x1xf32>
    %213 = vector.broadcast %212 : vector<1x1xf32> to vector<1x4xf32>
    %214 = arith.mulf %186, %213 : vector<1x4xf32>
    %215 = arith.addf %211, %214 : vector<1x4xf32>
    %cst_58 = arith.constant -0.999998986 : f32
    %cst_59 = arith.constant 0.999998986 : f32
    %216 = vector.broadcast %cst_58 : f32 to vector<1x4xf32>
    %217 = arith.maximumf %216, %215 : vector<1x4xf32>
    %218 = vector.broadcast %cst_59 : f32 to vector<1x4xf32>
    %219 = arith.minimumf %218, %217 : vector<1x4xf32>
    %c0_60 = arith.constant 0 : index
    %c0_61 = arith.constant 0 : index
    %c0_62 = arith.constant 0 : index
    %220 = vector.load %arg9[%c0_60, %c0_61, %c0_62] : memref<1x1x4xf32, #tpu.memory_space<vmem>>, vector<1x1x4xf32>
    %221 = vector.shape_cast %220 : vector<1x1x4xf32> to vector<1x4xf32>
    %222 = vector.shape_cast %219 : vector<1x4xf32> to vector<1x1x4xf32>
    tpu.vector_store %arg9[%c0_60, %c0_61, %c0_62], %222 {strides = array<i32>} : memref<1x1x4xf32, #tpu.memory_space<vmem>>, vector<1x1x4xf32>,
    return
  }
  func.func @transform_0(%arg0: i32) -> (i32, i32, i32) {
    %c0_i32 = arith.constant 0 : i32
    %c0_i32_0 = arith.constant 0 : i32
    %c0_i32_1 = arith.constant 0 : i32
    return %arg0, %c0_i32, %c0_i32_0 : i32, i32, i32
  }
  func.func @transform_1(%arg0: i32) -> (i32, i32, i32) {
    %c0_i32 = arith.constant 0 : i32
    %c0_i32_0 = arith.constant 0 : i32
    %c0_i32_1 = arith.constant 0 : i32
    return %arg0, %c0_i32, %c0_i32_0 : i32, i32, i32
  }
  func.func @transform_2(%arg0: i32) -> (i32, i32, i32) {
    %c0_i32 = arith.constant 0 : i32
    %c0_i32_0 = arith.constant 0 : i32
    %c0_i32_1 = arith.constant 0 : i32
    return %arg0, %c0_i32, %c0_i32_0 : i32, i32, i32
  }
  func.func @transform_3(%arg0: i32) -> (i32, i32, i32) {
    %c0_i32 = arith.constant 0 : i32
    %c0_i32_0 = arith.constant 0 : i32
    %c0_i32_1 = arith.constant 0 : i32
    return %arg0, %c0_i32, %c0_i32_0 : i32, i32, i32
  }
  func.func @transform_4(%arg0: i32) -> (i32, i32, i32) {
    %c0_i32 = arith.constant 0 : i32
    %c0_i32_0 = arith.constant 0 : i32
    %c0_i32_1 = arith.constant 0 : i32
    return %arg0, %c0_i32, %c0_i32_0 : i32, i32, i32
  }
  func.func @transform_5(%arg0: i32) -> (i32, i32, i32) {
    %c0_i32 = arith.constant 0 : i32
    %c0_i32_0 = arith.constant 0 : i32
    %c0_i32_1 = arith.constant 0 : i32
    return %arg0, %c0_i32, %c0_i32_0 : i32, i32, i32
  }
  func.func @transform_6(%arg0: i32) -> (i32, i32, i32) {
    %c0_i32 = arith.constant 0 : i32
    %c0_i32_0 = arith.constant 0 : i32
    %c0_i32_1 = arith.constant 0 : i32
    return %arg0, %c0_i32, %c0_i32_0 : i32, i32, i32
  }
  func.func @transform_7(%arg0: i32) -> (i32, i32, i32) {
    %c0_i32 = arith.constant 0 : i32
    %c0_i32_0 = arith.constant 0 : i32
    %c0_i32_1 = arith.constant 0 : i32
    return %arg0, %c0_i32, %c0_i32_0 : i32, i32, i32
  }
  func.func @transform_8(%arg0: i32) -> (i32, i32, i32) {
    %c0_i32 = arith.constant 0 : i32
    %c0_i32_0 = arith.constant 0 : i32
    %c0_i32_1 = arith.constant 0 : i32
    return %arg0, %c0_i32, %c0_i32_0 : i32, i32, i32
  }
  func.func @transform_9(%arg0: i32) -> (i32, i32, i32) {
    %c0_i32 = arith.constant 0 : i32
    %c0_i32_0 = arith.constant 0 : i32
    %c0_i32_1 = arith.constant 0 : i32
    return %arg0, %c0_i32, %c0_i32_0 : i32, i32, i32
  }
  func.func @transform_10(%arg0: i32) -> (i32, i32, i32) {
    %c0_i32 = arith.constant 0 : i32
    %c0_i32_0 = arith.constant 0 : i32
    %c0_i32_1 = arith.constant 0 : i32
    return %arg0, %c0_i32, %c0_i32_0 : i32, i32, i32
  }
}

</mosaic_0001>

<bundles_post_ra>
// kernel: _lambda_.1
= control target key start
LH: loop header
LB: loop body
LE: loop exit
PB: predicated region body
PF: predicated region fallthrough
CT: control target
= control target key end

     0   :  { %s1513_s13 = smov 0   ;;  %s1691_s0 = inlined_call_operand.vmem [shape: f32[2,4,256], index: 0, kind: input, shape index: {}]   ;;  %s1692_s1 = inlined_call_operand.vmem [shape: f32[2,1,256], index: 1, kind: input, shape index: {}]   ;;  %s1693_s2 = inlined_call_operand.vmem [shape: f32[2,1,256], index: 2, kind: input, shape index: {}]   ;;  %s1694_s3 = inlined_call_operand.vmem [shape: f32[2,3,4], index: 3, kind: input, shape index: {}]   ;;  %s1695_s4 = inlined_call_operand.vmem [shape: f32[2,4,4], index: 4, kind: input, shape index: {}]   ;;  %s1696_s5 = inlined_call_operand.vmem [shape: f32[2,4,1], index: 5, kind: input, shape index: {}]   ;;  %s1697_s6 = inlined_call_operand.vmem [shape: f32[2,4,1], index: 6, kind: output, shape index: {0}]   ;;  %s1698_s7 = inlined_call_operand.vmem [shape: f32[2,4,4], index: 7, kind: output, shape index: {1}]   ;;  %s1699_s8 = inlined_call_operand.vmem [shape: f32[2,1,4], index: 8, kind: output, shape index: {2}]   ;;  %s1700_s9 = inlined_call_operand.vmem [shape: f32[2,4,1], index: 9, kind: output, shape index: {3}]   ;;  %s1701_s10 = inlined_call_operand.vmem [shape: f32[2,1,1], index: 10, kind: output, shape index: {4}]  }
   0x1 LB: > { %s1365_s14 = sadd.s32 4294967295, %s1449_s13   ;;  %p1369_p0 = scmp.ge.s32.totalorder %s1449_s13, 1  ;;  %s1449_s13 = sphi %s1513_s13, %s21_s13  }
   0x2   : > { %p366_p1 = scmp.lt.s32.totalorder %s1449_s13, 3 }
   0x4   : > { %p367_p2 = pnand %p1369_p0, %p366_p1 }
   0x5   : > { %p437_p3 = scmp.lt.s32.totalorder (!%p367_p2), %s1365_s14, 1  ;;  %v484_v0 = vlaneseq (!%p367_p2)  ;;  %vm512_vm0 = vcmask (!%p367_p2), 1043456   ;;  %v1451_v21 = vmov (!%p367_p2), 0   ;;  %vm519_vm1 = vcmask (!%p367_p2), 3072  }
   0x6   : > { %370 = sbr.rel (%p367_p2) target bundleno = 475 (0x1db), region = 44  ;;  %1425 = vset.pattern.permute.xlu1 (!%p367_p2), %v1451_v21  ;;  %1426 = vset.pattern.permute.xlu0 (!%p367_p2), %v1451_v21 }
   0x7   : > { %v485_v1 = vshrl.u32 (!%p367_p2), %v484_v0, 7 }
   0x9   : > { %v486_v2 = vsub.s32 (!%p367_p2), 0, %v485_v1  ;;  %v490_v3 = vsub.s32 (!%p367_p2), 1, %v485_v1 }
   0xd   : > { %s1705_s14 = smov (!%p437_p3, %s1365_s14), 1 }
   0xe   : > { %s1399_s15 = sshll.u32 %s1705_s14, 3  ;;  %s1372_s16 = sshll.u32 %s1705_s14, 1 }
   0xf   : > { %s441_s19 = scalar_lea.vmem %s1691_s0, %s1399_s15  ;;  %s445_s22 = scalar_lea.vmem %s1692_s1, %s1372_s16 }
  0x10   : > { %s449_s25 = scalar_lea.vmem %s1693_s2, %s1372_s16  ;;  %v481_v4 = vld [vmem:[%s445_s22] sm:$0x3]  ;;  %s1537_s26 = sshll.u32 %s1705_s14, 2 }
  0x11   : > { %v482_v5 = vld [vmem:[%s449_s25] sm:$0x3]  ;;  %v487_v6 = vrot.slane %v481_v4, %v486_v2  ;;  %v491_v7 = vrot.slane %v481_v4, %v490_v3  ;;  %s461_s29 = scalar_lea.vmem %s1696_s5, %s1537_s26  ;;  %s465_s12 = scalar_lea.vmem %s1697_s6, %s1537_s26 }
  0x12   : > { %v480_v8 = vld [vmem:[%s441_s19] sm:$0xff]  ;;  %v500_v9 = vrot.slane %v482_v5, %v486_v2  ;;  %v504_v10 = vrot.slane %v482_v5, %v490_v3  ;;  %s453_s17 = scalar_lea.vmem %s1694_s3, %s1537_s26  ;;  %s476_s20 = scalar_lea.vmem %s1700_s9, %s1537_s26 }
  0x13   : > { %v492_v11 = vcombine.low %v487_v6, %v491_v7  ;;  %v1118_v22 = vld [vmem:[%s461_s29] sm:$0xf]  ;;  %s457_s23 = scalar_lea.vmem %s1695_s4, %s1537_s26  ;;  %s469_s27 = scalar_lea.vmem %s1698_s7, %s1537_s26 }
  0x14   : > { %v505_v12 = vcombine.low %v500_v9, %v504_v10  ;;  %1121 = vperm.xlu1 %1425, %v1118_v22   ;;  %v578_v35 = vld [vmem:[%s453_s17] sm:$0x7]  ;;  %s472_s29 = scalar_lea.vmem %s1699_s8, %s1705_s14 }
  0x15   : > { %v494_v13 = vsub.f32 %v480_v8, %v492_v11  ;;  %v579_v40 = vmul.f32 0.1, %v578_v35 }
  0x16   : > { %v507_v14 = vmul.f32 %v505_v12, %v480_v8 }
  0x17   : > { %v495_v15 = vmul.f32 %v494_v13, %v494_v13  ;;  %1427 = vtanh.f32 %v579_v40 }
  0x19   : > { %v508_v16 = vadd.f32 %v507_v14, %v495_v15 }
  0x1b   : > { %v510_v17 = vcombine.high %v508_v16, %v508_v16  ;;  %v513_v18 = vsel %vm512_vm0, %v508_v16, 0.0 }
  0x1d   : > { %v514_v19 = vsel %vm512_vm0, %v510_v17, 0.0  ;;  %v1452_v17 = vmov 2102212464  }
  0x1e   : > { %v515_v20 = vadd.f32 %v514_v19, %v513_v18 }
  0x20   : > { %516 = vadd.xlane.f32.xlu0 %v515_v20  ;;  %v1453_v20 = vmov 683565275  }
  0x21   : > { %v1428_v43 = vpop.eup %1427 }
  0x22   : > { %v581_v47 = vmul.f32 0.5235988, %v1428_v43  ;;  %v582_v48 = vmul.f32 0.17453292, %v1428_v43 }
  0x24   : > { %v1560_v51 = vmul.f32 0.5, %v581_v47  ;;  %v1562_v52 = vmul.f32 0.5, %v582_v48 }
  0x26   : > { %v587_v55 = vand.u32 2139095040, %v1560_v51  ;;  %v795_v56 = vand.u32 2139095040, %v1562_v52  ;;  %v584_v15 = vand.u32 2147483647, %v1560_v51 }
  0x28   : > { %v588_v59 = vshrl.u32 %v587_v55, 23  ;;  %v796_v60 = vshrl.u32 %v795_v56, 23  ;;  %v591_v22 = vand.u32 8388607, %v584_v15 }
  0x2a   : > { %v1380_v63 = vadd.s32 4294967169, %v588_v59  ;;  %v1388_v0 = vadd.s32 4294967169, %v796_v60  ;;  %v792_v60 = vand.u32 2147483647, %v1562_v52 }
  0x2c   : > { %v594_v3 = vadd.s32 1, %v1380_v63  ;;  %v802_v4 = vadd.s32 1, %v1388_v0 }
  0x2e   : > { %vm595_vm3 = vcmp.gt.s32.totalorder %v594_v3, 0  ;;  %vm803_vm4 = vcmp.gt.s32.totalorder %v802_v4, 0 }
  0x2f   : > { %v596_v7 = vsel %vm595_vm3, %v594_v3, 0  ;;  %v804_v8 = vsel %vm803_vm4, %v802_v4, 0  ;;  %vm794_vm3 = vcmp.lt.s32.totalorder %v1562_v52, 0  ;;  %vm793_vm4 = vcmp.le.f32.partialorder %v792_v60, 0.7853982 }
  0x30   : > { %v598_v9 = vand.u32 31, %v596_v7  ;;  %v1567_v10 = vand.u32 31, %v804_v8  ;;  %v597_v11 = vshrl.u32 %v596_v7, 5 }
  0x32   : > { %v1570_v12 = vsub.s32 32, %v1567_v10  ;;  %v599_v13 = vsub.s32 32, %v598_v9  ;;  %v610_v18 = vshll.u32 %v1452_v17, %v598_v9  ;;  %v601_v21 = vshll.u32 %v1453_v20, %v598_v9 }
  0x33   : > { %vm616_vm5 = vcmp.lt.s32.totalorder %v597_v11, 1  ;;  %vm617_vm6 = vcmp.lt.s32.totalorder %v597_v11, 2  ;;  %vm618_vm7 = vcmp.lt.s32.totalorder %v597_v11, 3  ;;  %vm619_vm8 = vcmp.lt.s32.totalorder %v597_v11, 4 }
  0x34   : > { %v600_v47 = vshrl.u32 %v1453_v20, %v599_v13  ;;  %v809_v7 = vshll.u32 %v1453_v20, %v1567_v10 }
  0xad   : > { %v517_v23 = vpop.xlane.xlu0 %516 }
  0xae   : > { %v1547_v24 = vmul.f32 0.00390625, %v517_v23  ;;  %v1454_v23 = vmov 2475754826  }
  0xb0   : > { %v521_v25 = vsel %vm512_vm0, %v1547_v24, inf  ;;  %v528_v26 = vsel %vm512_vm0, %v1547_v24, -inf  ;;  %520 = vst.msk [vmem:[%s465_s12] sm:$0xf] %vm519_vm1, %v1547_v24  ;;  %s479_s12 = scalar_lea.vmem %s1701_s10, %s1705_s14 }
  0xb1   : > { %v522_v27 = vrot.slane %v521_v25, 4  ;;  %v529_v28 = vrot.slane %v528_v26, 4 }
  0xb3   : > { %v523_v29 = vmin.f32 %v521_v25, %v522_v27  ;;  %v530_v30 = vmax.f32 %v528_v26, %v529_v28  ;;  %v602_v25 = vshrl.u32 %v1454_v23, %v599_v13  ;;  %v604_v26 = vshll.u32 %v1454_v23, %v598_v9 }
  0xb4   : > { %v1455_v27 = vmov 2131351028  }
  0xb5   : > { %v524_v31 = vrot.slane %v523_v29, 2  ;;  %v531_v32 = vrot.slane %v530_v30, 2  ;;  %v605_v28 = vshrl.u32 %v1455_v27, %v599_v13  ;;  %v603_v35 = vor.u32 %v602_v25, %v601_v21 }
  0xb6   : > { %v813_v11 = vshrl.u32 %v1455_v27, %v1570_v12 }
  0xb7   : > { %v525_v33 = vmin.f32 %v523_v29, %v524_v31  ;;  %v532_v34 = vmax.f32 %v530_v30, %v531_v32  ;;  %v607_v30 = vshll.u32 %v1455_v27, %v598_v9  ;;  %v608_v31 = vshrl.u32 %v1452_v17, %v599_v13 }
  0xb8   : > { %v1456_v32 = vmov 920167782  }
  0xb9   : > { %v526_v36 = vrot.slane %v525_v33, 1  ;;  %v533_v37 = vrot.slane %v532_v34, 1  ;;  %v819_v21 = vshrl.u32 %v1456_v32, %v1570_v12 }
  0xbb   : > { %v527_v38 = vmin.f32 %v525_v33, %v526_v36  ;;  %v534_v39 = vmax.f32 %v532_v34, %v533_v37  ;;  %v611_v33 = vshrl.u32 %v1456_v32, %v599_v13  ;;  %v592_v34 = vor.u32 8388608, %v591_v22 }
  0xbc   : > { %v606_v36 = vor.u32 %v605_v28, %v604_v26  ;;  %v613_v37 = vshll.u32 %v1456_v32, %v598_v9  ;;  %v812_v9 = vshll.u32 %v1454_v23, %v1567_v10 }
  0xbd   : > { %v535_v41 = vsub.f32 %v534_v39, %v527_v38  ;;  %v538_v44 = vsub.f32 %v1547_v24, %v527_v38  ;;  %v609_v39 = vor.u32 %v608_v31, %v607_v30  ;;  %v612_v40 = vor.u32 %v611_v33, %v610_v18 }
  0xbe   : > { %v816_v18 = vshrl.u32 %v1452_v17, %v1570_v12 }
  0xbf   : > { %vm536_vm2 = vcmp.gt.f32.partialorder %v535_v41, 0.0 }
  0xc0   : > { %v537_v42 = vsel %vm536_vm2, %v535_v41, 1.0  ;;  %v1457_v41 = vmov 1326507024   ;;  %vm1646_vm2 = vcmp.le.f32.partialorder %v584_v15, 0.7853982 }
  0xc1   : > { %1429 = vrcp.f32 %v537_v42  ;;  %v614_v42 = vshrl.u32 %v1457_v41, %v599_v13  ;;  %v815_v13 = vshll.u32 %v1455_v27, %v1567_v10  ;;  %v821_v27 = vshll.u32 %v1456_v32, %v1567_v10 }
  0xc2   : > { %v822_v28 = vshrl.u32 %v1457_v41, %v1570_v12 }
  0xc3   : > { %v817_v25 = vor.u32 %v816_v18, %v815_v13 }
  0xc4   : > { %v823_v31 = vor.u32 %v822_v28, %v821_v27 }
  0xcb   : > { %v1430_v45 = vpop.eup %1429 }
  0xcc   : > { %v540_v46 = vmul.f32 %v1430_v45, %v538_v44  ;;  %v615_v44 = vor.u32 %v614_v42, %v613_v37  ;;  %v624_v45 = vsel %vm616_vm5, %v603_v35, %v606_v36 }
  0xce   : > { %v541_v49 = vmul.f32 %v540_v46, %v540_v46  ;;  %v625_v46 = vsel %vm619_vm8, %v612_v40, 920167782  ;;  %v629_v56 = vsel %vm619_vm8, %v615_v44, 1326507024 }
  0xcf   : > { %v626_v48 = vsel %vm618_vm7, %v609_v39, %v625_v46  ;;  %v630_v59 = vsel %vm618_vm7, %v612_v40, %v629_v56 }
  0xd0   : > { %v542_v50 = vsub.f32 0.0, %v541_v49  ;;  %v628_v49 = vsel %vm616_vm5, %v606_v36, %v609_v39  ;;  %v627_v55 = vsel %vm617_vm6, %v624_v45, %v626_v48 }
  0xd1   : > { %v631_v0 = vsel %vm617_vm6, %v628_v49, %v630_v59 }
  0xd2   : > { %v543_v53 = vmul.f32 20.0, %v542_v50  ;;  %v632_v50 = vshll.u32 %v592_v34, 8 }
  0xd4   : > { %v544_v54 = vsel %vm512_vm0, %v543_v53, -inf  ;;  %v1594_v3 = vmul.u32.u64.low %v632_v50, %v627_v55  ;;  %v1595_v4 = vmul.u32.u64.high %v632_v50, %v627_v55, %v1594_v3 }
  0xd5   : > { %v545_v57 = vrot.slane %v544_v54, 4 }
  0xd7   : > { %v546_v58 = vmax.f32 %v544_v54, %v545_v57  ;;  %v621_v54 = vsel %vm619_vm8, %v609_v39, 2102212464  ;;  %v620_v57 = vsel %vm616_vm5, %v600_v47, %v603_v35 }
  0xd9   : > { %v547_v61 = vrot.slane %v546_v58, 2 }
  0xdb   : > { %v548_v62 = vmax.f32 %v546_v58, %v547_v61  ;;  %v622_v58 = vsel %vm618_vm7, %v606_v36, %v621_v54 }
  0xdc   : > { %v623_v63 = vsel %vm617_vm6, %v620_v57, %v622_v58 }
  0xdd   : > { %v549_v1 = vrot.slane %v548_v62, 1 }
  0xdf   : > { %v550_v2 = vmax.f32 %v548_v62, %v549_v1  ;;  %v805_v62 = vshrl.u32 %v804_v8, 5  ;;  %v810_v8 = vshrl.u32 %v1454_v23, %v1570_v12  ;;  %v814_v23 = vor.u32 %v813_v11, %v812_v9 }
  0xe1   : > { %v551_v5 = vsub.f32 %v543_v53, %v550_v2  ;;  %v1591_v1 = vmul.u32.u64.low %v632_v50, %v631_v0  ;;  %v1592_v2 = vmul.u32.u64.high %v632_v50, %v631_v0, %v1591_v1  ;;  %v811_v22 = vor.u32 %v810_v8, %v809_v7 }
  0xe2   : > { %vm824_vm10 = vcmp.lt.s32.totalorder %v805_v62, 1  ;;  %vm826_vm11 = vcmp.lt.s32.totalorder %v805_v62, 3  ;;  %vm825_vm12 = vcmp.lt.s32.totalorder %v805_v62, 2  ;;  %vm827_vm13 = vcmp.lt.s32.totalorder %v805_v62, 4 }
  0xe3   : > { %v552_v6 = vmul.f32 1.442695, %v551_v5  ;;  %v799_v5 = vand.u32 8388607, %v792_v60  ;;  %vm641_vm9 = vc.u32 %v1592_v2, %v1594_v3  ;;  %v829_v33 = vsel %vm827_vm13, %v817_v25, 2102212464 }
  0xe4   : > { %v832_v34 = vsel %vm824_vm10, %v811_v22, %v814_v23  ;;  %v836_v36 = vsel %vm824_vm10, %v814_v23, %v817_v25  ;;  %v830_v32 = vsel %vm826_vm11, %v814_v23, %v829_v33 }
  0xe5   : > { %1431 = vpow2.f32 %v552_v6  ;;  %v808_v6 = vshrl.u32 %v1453_v20, %v1570_v12  ;;  %v642_v20 = vadd.s32 1, %v1595_v4  ;;  %v800_v30 = vor.u32 8388608, %v799_v5 }
  0xe7   : > { %v840_v41 = vshll.u32 %v800_v30, 8 }
  0xef   : > { %v1572_v14 = vpop.eup %1431 }
  0xf0   : > { %v554_v16 = vsel %vm512_vm0, %v1572_v14, 0.0  ;;  %vm586_vm0 = vcmp.lt.s32.totalorder %v1560_v51, 0 }
  0xf1   : > { %v555_v19 = vrot.slane %v554_v16, 4 }
  0xf3   : > { %v556_v29 = vadd.f32 %v555_v19, %v554_v16  ;;  %v639_v16 = vmul.u32 %v632_v50, %v623_v63  ;;  %v818_v19 = vshll.u32 %v1452_v17, %v1567_v10  ;;  %v837_v10 = vsel %vm827_vm13, %v823_v31, 1326507024 }
  0xf5   : > { %v557_v38 = vrot.slane %v556_v29, 2  ;;  %v820_v26 = vor.u32 %v819_v21, %v818_v19 }
  0xf7   : > { %v558_v43 = vadd.f32 %v557_v38, %v556_v29  ;;  %v643_v29 = vsel %vm641_vm9, %v642_v20, %v1595_v4  ;;  %v833_v35 = vsel %vm827_vm13, %v820_v26, 920167782  ;;  %v828_v38 = vsel %vm824_vm10, %v808_v6, %v811_v22 }
  0xf8   : > { %v644_v17 = vadd.s32 %v643_v29, %v639_v16  ;;  %v834_v39 = vsel %vm826_vm11, %v817_v25, %v833_v35  ;;  %v838_v40 = vsel %vm826_vm11, %v820_v26, %v837_v10  ;;  %v831_v49 = vsel %vm825_vm12, %v828_v38, %v830_v32 }
  0xf9   : > { %v559_v53 = vrot.slane %v558_v43, 1  ;;  %v835_v12 = vsel %vm825_vm12, %v832_v34, %v834_v39  ;;  %v839_v44 = vsel %vm825_vm12, %v836_v36, %v838_v40  ;;  %v847_v57 = vmul.u32 %v840_v41, %v831_v49 }
  0xfa   : > { %v645_v37 = vadd.s32 536870912, %v644_v17  ;;  %v1626_v46 = vmul.u32.u64.low %v840_v41, %v839_v44  ;;  %v1627_v47 = vmul.u32.u64.high %v840_v41, %v839_v44, %v1626_v46  ;;  %v640_v4 = vadd.s32 %v1594_v3, %v1592_v2 }
  0xfb   : > { %v560_v61 = vadd.f32 %v559_v53, %v558_v43  ;;  %v1631_v50 = vmul.u32.u64.low %v840_v41, %v835_v12  ;;  %v1632_v53 = vmul.u32.u64.high %v840_v41, %v835_v12, %v1631_v50  ;;  %vm676_vm11 = vweird.f32 %v1560_v51 }
  0xfc   : > { %v1622_v43 = vshrl.u32 %v645_v37, 30 }
  0xfd   : > { %1433 = vrcp.f32 %v560_v61  ;;  %vm849_vm14 = vc.u32 %v1627_v47, %v1631_v50  ;;  %v850_v58 = vadd.s32 1, %v1632_v53  ;;  %v848_v2 = vadd.s32 %v1631_v50, %v1627_v47 }
  0xfe   : > { %v647_v48 = vshll.u32 %v1622_v43, 30  ;;  %v670_v38 = vsub.s32 4, %v1622_v43 }
  0xff   : > { %v851_v61 = vsel %vm849_vm14, %v850_v58, %v1632_v53 }
 0x100   : > { %v648_v55 = vsub.s32 %v644_v17, %v647_v48  ;;  %v852_v62 = vadd.s32 %v851_v61, %v847_v57  ;;  %v671_v10 = vsel %vm586_vm0, %v670_v38, %v1622_v43 }
 0x101   : > { %v673_v32 = vsel %vm1646_vm2, 0, %v671_v10 }
 0x102   : > { %v853_v0 = vadd.s32 536870912, %v852_v62  ;;  %v780_v41 = vadd.s32 3, %v673_v32  ;;  %v677_v50 = vand.u32 3, %v673_v32 }
 0x104   : > { %v781_v46 = vand.u32 3, %v780_v41  ;;  %vm679_vm7 = vcmp.eq.s32.totalorder %v677_v50, 0  ;;  %vm682_vm8 = vcmp.eq.s32.totalorder %v677_v50, 2  ;;  %vm678_vm10 = vcmp.lt.s32.totalorder %v677_v50, 2 }
 0x106   : > { %vm783_vm5 = vcmp.eq.s32.totalorder %v781_v46, 0  ;;  %vm786_vm6 = vcmp.eq.s32.totalorder %v781_v46, 2  ;;  %vm782_vm9 = vcmp.lt.s32.totalorder %v781_v46, 2 }
 0x107   : > { %v1434_v42 = vpop.eup %1433 }
 0x108   : > { %v562_v45 = vmul.f32 %v1434_v42, %v1572_v14  ;;  %v650_v14 = vsub.s32 0, %v648_v55 }
 0x10a   : > { %v564_v54 = vmul.f32 %v562_v45, %v1547_v24  ;;  %563 = vst.msk [vmem:[%s476_s20] sm:$0xf] %vm519_vm1, %v562_v45  ;;  %v1381_v59 = vmin.u32 %v650_v14, %v648_v55  ;;  %v854_v24 = vshrl.u32 %v853_v0, 30 }
 0x10c   : > { %v565_v56 = vsel %vm519_vm1, %v564_v54, 0.0  ;;  %v652_v63 = vclz %v1381_v59  ;;  %v855_v6 = vshll.u32 %v854_v24, 30  ;;  %v878_v44 = vsub.s32 4, %v854_v24 }
 0x10d   : > { %566 = vadd.xlane.f32.xlu0 %v565_v56 }
 0x10e   : > { %v1382_v1 = vadd.s32 4294967294, %v652_v63  ;;  %v856_v11 = vsub.s32 %v852_v62, %v855_v6  ;;  %v879_v48 = vsel %vm794_vm3, %v878_v44, %v854_v24 }
 0x110   : > { %vm1383_vm15 = vcmp.lt.s32.totalorder %v1382_v1, 0  ;;  %v858_v18 = vsub.s32 0, %v856_v11 }
 0x111   : > { %v655_v5 = vsel %vm1383_vm15, 0, %v1382_v1 }
 0x112   : > { %v656_v7 = vsub.s32 32, %v655_v5  ;;  %v657_v8 = vshll.u32 %v648_v55, %v655_v5  ;;  %v660_v9 = vsub.s32 4294967266, %v655_v5  ;;  %v1389_v20 = vmin.u32 %v858_v18, %v856_v11 }
 0x113   : > { %v881_v55 = vsel %vm793_vm4, 0, %v879_v48  ;;  %v1077_v48 = vld [vmem:[%s457_s23] sm:$0xf] }
 0x114   : > { %v658_v13 = vshrl.u32 %v640_v4, %v656_v7  ;;  %v661_v16 = vadd.s32 127, %v660_v9  ;;  %v860_v25 = vclz %v1389_v20  ;;  %v988_v14 = vadd.s32 3, %v881_v55 }
 0x115   : > { %v885_v63 = vand.u32 3, %v881_v55 }
 0x116   : > { %v659_v19 = vor.u32 %v658_v13, %v657_v8  ;;  %v662_v21 = vshll.u32 %v661_v16, 23  ;;  %v1390_v27 = vadd.s32 4294967294, %v860_v25  ;;  %v989_v0 = vand.u32 3, %v988_v14 }
 0x117   : > { %vm890_vm12 = vcmp.eq.s32.totalorder %v885_v63, 2  ;;  %vm887_vm14 = vcmp.eq.s32.totalorder %v885_v63, 0  ;;  %v1079_v14 = vrot.slane %v1077_v48, 6 }
 0x118   : > { %v663_v22 = vor.u32 4788187, %v662_v21  ;;  %v666_v23 = vcvt.s32.f32 %v659_v19  ;;  %vm1391_vm1 = vcmp.lt.s32.totalorder %v1390_v27, 0  ;;  %vm994_vm13 = vcmp.eq.s32.totalorder %v989_v0, 2 }
 0x119   : > { %v863_v30 = vsel %vm1391_vm1, 0, %v1390_v27  ;;  %vm991_vm15 = vcmp.eq.s32.totalorder %v989_v0, 0  ;;  %vm990_vm1 = vcmp.lt.s32.totalorder %v989_v0, 2 }
 0x11a   : > { %v664_v26 = vand.u32 2147483647, %v663_v22  ;;  %v864_v17 = vsub.s32 32, %v863_v30  ;;  %v865_v31 = vshll.u32 %v856_v11, %v863_v30  ;;  %v868_v33 = vsub.s32 4294967266, %v863_v30 }
 0x11c   : > { %v667_v28 = vmul.f32 %v666_v23, %v664_v26  ;;  %v866_v36 = vshrl.u32 %v848_v2, %v864_v17  ;;  %v869_v37 = vadd.s32 127, %v868_v33 }
 0x11e   : > { %v668_v29 = vxor.u32 2147483648, %v667_v28  ;;  %v867_v15 = vor.u32 %v866_v36, %v865_v31  ;;  %v870_v39 = vshll.u32 %v869_v37, 23 }
 0x120   : > { %v669_v34 = vsel %vm586_vm0, %v668_v29, %v667_v28  ;;  %v871_v12 = vor.u32 4788187, %v870_v39  ;;  %v874_v40 = vcvt.s32.f32 %v867_v15  ;;  %vm886_vm0 = vcmp.lt.s32.totalorder %v885_v63, 2 }
 0x121   : > { %v672_v35 = vsel %vm1646_vm2, %v1560_v51, %v669_v34  ;;  %vm884_vm2 = vweird.f32 %v1562_v52 }
 0x122   : > { %1435 = vcosq.f32 %v672_v35  ;;  %v872_v42 = vand.u32 2147483647, %v871_v12 }
 0x123   : > { %1437 = vsinq.f32 %v672_v35 }
 0x124   : > { %v875_v45 = vmul.f32 %v874_v40, %v872_v42 }
 0x126   : > { %v876_v47 = vxor.u32 2147483648, %v875_v45 }
 0x128   : > { %v877_v53 = vsel %vm794_vm3, %v876_v47, %v875_v45  ;;  %vm1113_vm3 = vcmask 26626  }
 0x129   : > { %v880_v54 = vsel %vm793_vm4, %v1562_v52, %v877_v53  ;;  %vm576_vm4 = vcmask 0  }
 0x12a   : > { %1439 = vcosq.f32 %v880_v54 }
 0x12b   : > { %1441 = vsinq.f32 %v880_v54 }
 0x12c   : > { %v1436_v49 = vpop.eup %1435 }
 0x12d   : > { %v1438_v43 = vpop.eup %1437  ;;  %v683_v57 = vxor.u32 2147483648, %v1436_v49 }
 0x12e   : > { %v680_v56 = vxor.u32 2147483648, %v1438_v43 }
 0x12f   : > { %v788_v58 = vsel %vm786_vm6, %v683_v57, %v1438_v43  ;;  %v684_v61 = vsel %vm682_vm8, %v683_v57, %v1438_v43 }
 0x130   : > { %v785_v60 = vsel %vm783_vm5, %v1436_v49, %v680_v56  ;;  %v681_v59 = vsel %vm679_vm7, %v1436_v49, %v680_v56 }
 0x131   : > { %v789_v62 = vsel %vm782_vm9, %v785_v60, %v788_v58  ;;  %v685_v1 = vsel %vm678_vm10, %v681_v59, %v684_v61  ;;  %v1082_v60 = vrot.slane %v1077_v48, 7  ;;  %v1122_v58 = vpop.permute.xlu1 %1121 }
 0x132   : > { %v790_v24 = vsel %vm676_vm11, nan, %v789_v62  ;;  %v686_v5 = vsel %vm676_vm11, nan, %v685_v1 }
 0x133   : > { %v1005_v9 = vmul.f32 0.0, %v790_v24  ;;  %v1000_v16 = vrot.slane %v686_v5, 7  ;;  %v1016_v19 = vrot.slane %v790_v24, 7  ;;  %v1020_v21 = vmul.f32 0.0, %v686_v5 }
 0x134   : > { %v1440_v4 = vpop.eup %1439  ;;  %v1088_v24 = vrot.slane %v1077_v48, 1 }
 0x135   : > { %v1442_v6 = vpop.eup %1441  ;;  %v891_v7 = vxor.u32 2147483648, %v1440_v4  ;;  %v1007_v26 = vrot.slane %v1005_v9, 7  ;;  %v1022_v30 = vrot.slane %v1020_v21, 7 }
 0x136   : > { %v888_v8 = vxor.u32 2147483648, %v1442_v6 }
 0x137   : > { %v892_v11 = vsel %vm890_vm12, %v891_v7, %v1442_v6  ;;  %v996_v13 = vsel %vm994_vm13, %v891_v7, %v1442_v6 }
 0x138   : > { %v889_v51 = vsel %vm887_vm14, %v1440_v4, %v888_v8  ;;  %v993_v18 = vsel %vm991_vm15, %v1440_v4, %v888_v8  ;;  %v1123_v8 = vrot.slane %v1122_v58, 6 }
 0x139   : > { %v893_v20 = vsel %vm886_vm0, %v889_v51, %v892_v11  ;;  %v997_v22 = vsel %vm990_vm1, %v993_v18, %v996_v13 }
 0x13a   : > { %v894_v23 = vsel %vm884_vm2, nan, %v893_v20  ;;  %v998_v25 = vsel %vm884_vm2, nan, %v997_v22 }
 0x13b   : > { %v1002_v27 = vmul.f32 %v1000_v16, %v894_v23  ;;  %v1003_v28 = vmul.f32 0.0, %v998_v25  ;;  %v1010_v2 = vmul.f32 0.0, %v894_v23  ;;  %v1011_v3 = vmul.f32 %v1000_v16, %v998_v25 }
 0x13c   : > { %v1018_v29 = vmul.f32 %v1016_v19, %v894_v23  ;;  %v1026_v52 = vmul.f32 %v1016_v19, %v998_v25 }
 0x13d   : > { %v1004_v17 = vsub.f32 %v1002_v27, %v1003_v28  ;;  %v1012_v31 = vadd.f32 %v1011_v3, %v1010_v2 }
 0x13e   : > { %v1019_v33 = vsub.f32 %v1018_v29, %v1003_v28  ;;  %v1027_v34 = vadd.f32 %v1026_v52, %v1010_v2 }
 0x13f   : > { %v1009_v35 = vsub.f32 %v1004_v17, %v1007_v26  ;;  %v1014_v36 = vsub.f32 %v1012_v31, %v1007_v26 }
 0x140   : > { %v1024_v37 = vadd.f32 %v1022_v30, %v1019_v33  ;;  %v1028_v38 = vadd.f32 %v1027_v34, %v1022_v30  ;;  %v1126_v34 = vrot.slane %v1122_v58, 7 }
 0x141   : > { %v1030_v15 = vrot.slane %v1009_v35, 7  ;;  %v1033_v39 = vmul.f32 0.0, %v1014_v36  ;;  %v1049_v10 = vrot.slane %v1014_v36, 7  ;;  %v1052_v32 = vmul.f32 0.0, %v1009_v35 }
 0x142   : > { %v1038_v12 = vmul.f32 0.0, %v1024_v37  ;;  %v1044_v40 = vrot.slane %v1028_v38, 7  ;;  %v1057_v41 = vmul.f32 0.0, %v1028_v38  ;;  %v1063_v42 = vrot.slane %v1024_v37, 7 }
 0x143   : > { %v1032_v44 = vmul.f32 %v1030_v15, %v894_v23  ;;  %v1035_v45 = vrot.slane %v1033_v39, 7  ;;  %v1051_v46 = vmul.f32 %v1049_v10, %v894_v23  ;;  %v1054_v47 = vrot.slane %v1052_v32, 7 }
 0x144   : > { %v1040_v49 = vrot.slane %v1038_v12, 7  ;;  %v1046_v50 = vmul.f32 %v1044_v40, %v998_v25  ;;  %v1059_v43 = vrot.slane %v1057_v41, 7  ;;  %v1065_v55 = vmul.f32 %v1063_v42, %v998_v25 }
 0x145   : > { %v1037_v53 = vsub.f32 %v1032_v44, %v1035_v45  ;;  %v1056_v54 = vadd.f32 %v1054_v47, %v1051_v46  ;;  %v1067_v56 = vmul.f32 %v1063_v42, %v894_v23  ;;  %v1072_v57 = vmul.f32 %v1044_v40, %v894_v23 }
 0x146   : > { %v1070_v63 = vmul.f32 %v1049_v10, %v998_v25  ;;  %v1075_v1 = vmul.f32 %v1030_v15, %v998_v25  ;;  %v1133_v32 = vrot.slane %v1122_v58, 1 }
 0x147   : > { %v1042_v59 = vsub.f32 %v1037_v53, %v1040_v49  ;;  %v1061_v61 = vadd.f32 %v1059_v43, %v1056_v54  ;;  %v1068_v62 = vsub.f32 %v1067_v56, %v1059_v43  ;;  %v1073_v0 = vadd.f32 %v1072_v57, %v1040_v49 }
 0x149   : > { %v1047_v4 = vsub.f32 %v1042_v59, %v1046_v50  ;;  %v1066_v5 = vsub.f32 %v1061_v61, %v1065_v55  ;;  %v1069_v6 = vadd.f32 %v1068_v62, %v1054_v47  ;;  %v1074_v7 = vsub.f32 %v1073_v0, %v1035_v45 }
 0x14b   : > { %v1071_v9 = vadd.f32 %v1070_v63, %v1069_v6  ;;  %v1081_v11 = vmul.f32 %v1079_v14, %v1047_v4  ;;  %v1084_v13 = vmul.f32 %v1082_v60, %v1066_v5  ;;  %v1092_v16 = vmul.f32 %v1082_v60, %v1047_v4 }
 0x14c   : > { %v1076_v51 = vadd.f32 %v1075_v1, %v1074_v7  ;;  %v1093_v18 = vmul.f32 %v1079_v14, %v1066_v5  ;;  %v1099_v19 = vmul.f32 %v1077_v48, %v1047_v4  ;;  %v1100_v21 = vmul.f32 %v1088_v24, %v1066_v5 }
 0x14d   : > { %v1085_v20 = vsub.f32 %v1081_v11, %v1084_v13  ;;  %v1086_v22 = vmul.f32 %v1077_v48, %v1071_v9  ;;  %v1095_v23 = vmul.f32 %v1088_v24, %v1071_v9  ;;  %v1102_v26 = vmul.f32 %v1079_v14, %v1071_v9 }
 0x14e   : > { %v1090_v25 = vmul.f32 %v1088_v24, %v1076_v51  ;;  %v1094_v27 = vadd.f32 %v1093_v18, %v1092_v16  ;;  %v1097_v28 = vmul.f32 %v1077_v48, %v1076_v51  ;;  %v1101_v2 = vsub.f32 %v1099_v19, %v1100_v21 }
 0x14f   : > { %v1087_v3 = vsub.f32 %v1085_v20, %v1086_v22  ;;  %v1104_v29 = vmul.f32 %v1082_v60, %v1076_v51  ;;  %v1106_v30 = vmul.f32 %v1088_v24, %v1047_v4  ;;  %v1107_v52 = vmul.f32 %v1077_v48, %v1066_v5 }
 0x150   : > { %v1096_v17 = vadd.f32 %v1095_v23, %v1094_v27  ;;  %v1103_v31 = vadd.f32 %v1102_v26, %v1101_v2  ;;  %v1109_v33 = vmul.f32 %v1082_v60, %v1071_v9  ;;  %v1111_v37 = vmul.f32 %v1079_v14, %v1076_v51 }
 0x151   : > { %v1091_v35 = vsub.f32 %v1087_v3, %v1090_v25  ;;  %v1108_v36 = vadd.f32 %v1107_v52, %v1106_v30 }
 0x152   : > { %v1098_v38 = vsub.f32 %v1096_v17, %v1097_v28  ;;  %v1105_v15 = vadd.f32 %v1104_v29, %v1103_v31 }
 0x153   : > { %v1110_v39 = vsub.f32 %v1108_v36, %v1109_v33  ;;  %1114 = vst.msk [vmem:[%s469_s27 - $0x2] sm:$0x4] %vm1113_vm3, %v1091_v35  ;;  %v1125_v10 = vmul.f32 %v1123_v8, %v1091_v35 }
 0x154   : > { %1115 = vst.msk [vmem:[%s469_s27 - $0x1] sm:$0x4] %vm1113_vm3, %v1098_v38  ;;  %1116 = vst.msk [vmem:[%s469_s27] sm:$0x4] %vm1113_vm3, %v1105_v15  ;;  %v1128_v12 = vmul.f32 %v1126_v34, %v1098_v38  ;;  %v1131_v40 = vmul.f32 %v1122_v58, %v1105_v15 }
 0x155   : > { %v1112_v41 = vadd.f32 %v1111_v37, %v1110_v39 }
 0x156   : > { %v1129_v42 = vadd.f32 %v1128_v12, %v1125_v10 }
 0x157   : > { %1117 = vst.msk [vmem:[%s469_s27 + $0x1] sm:$0x4] %vm1113_vm3, %v1112_v41  ;;  %v1135_v44 = vmul.f32 %v1133_v32, %v1112_v41 }
 0x158   : > { %v1132_v45 = vadd.f32 %v1131_v40, %v1129_v42 }
 0x15a   : > { %v1136_v46 = vadd.f32 %v1135_v44, %v1132_v45 }
 0x15c   : > { %v1396_v47 = vclamps-f32 %v1136_v46, 0.999999 }
 0x15e   : > { %1139 = vst.msk [vmem:[%s472_s29 - $0x2] sm:$0x4] %vm1113_vm3, %v1396_v47 }
 0x19a   : > { %v567_v48 = vpop.xlane.xlu0 %566 }
 0x19b   : > { %v568_v49 = vrot.slane %v567_v48, 4 }
 0x19d   : > { %v569_v50 = vadd.f32 %v568_v49, %v567_v48 }
 0x19f   : > { %v570_v43 = vrot.slane %v569_v50, 2 }
 0x1a1   : > { %v571_v53 = vadd.f32 %v570_v43, %v569_v50 }
 0x1a3   : > { %v572_v54 = vrot.slane %v571_v53, 1 }
 0x1a5   : > { %v573_v55 = vadd.f32 %v572_v54, %v571_v53 }
 0x1a7   : > { %1400 = vpush %v573_v55 }
 0x1d8   : > { %s1401_s15 = spop %1400 }
 0x1d9   : > { %v575_v56 = vstv %s1401_s15 }
 0x1da   : > { %577 = vst.msk [vmem:[%s479_s12] sm:$0x1] %vm576_vm4, %v575_v56 }
 0x1db PF: > { %s21_s13 = sadd.s32 1, %s1449_s13  }
 0x1dc   : > { %p18_p4 = scmp.ge.s32.totalorder %s21_s13, 4  }
 0x1de   :  { %20 = sbr.rel (!%p18_p4) target bundleno = 1 (0x1), region = 137 }

</bundles_post_ra>
